<compile_context>
chip_gen: v6e
topology: v6e:2x2x1
jax: 0.10.0
libtpu: 0.0.40
codegen_flags: <defaults>
</compile_context>

<pallas_src>
import jax
import jax.numpy as jnp
from jax.experimental import pallas as pl
from jax.experimental.pallas import tpu as pltpu

INPUT_DIM = 7
HIDDEN_DIM1 = 64
HIDDEN_DIM2 = 64
LATENT_DIM = 5

LANE_W = 128        # lane width of the weight slab / wide activations
XE_LANES = 16       # packed input width: eps at [0,5), x at [8,15)
EPS_LANE = 0
X_LANE = 8

MAX_TILE_B = 2048   # per-step VMEM stays well under the 32 MiB scoped limit


def _r8(n):
    return ((n + 7) // 8) * 8


def _cdiv(a, b):
    return -(-a // b)


# ---- weight-slab row layout: every block starts at an 8-row-aligned offset --
_LAYOUT = (
    ("w1", XE_LANES),   # (16,128): rows [8,15) = enc W1 (7x64) at lanes [0,64)
    ("b1", 1),          # lanes [0,64)
    ("w2", LANE_W),     # (128,128): rows [0,64) = enc W2 at lanes [0,64)
    ("b2", 1),
    ("wh", LANE_W),     # (128,128): rows [0,64) = [Wmu | Wlogvar] at lanes [0,10)
    ("bh", 1),          # [bmu | blogvar] at lanes [0,10)
    ("dw1", 8),         # rows [0,5) = dec W1 (5x64) at lanes [0,64)
    ("db1", 1),
    ("dw2", LANE_W),    # rows [0,64) = dec W2 at lanes [0,64)
    ("db2", 1),
    ("dw3", LANE_W),    # rows [0,64) = dec W3 (64x7) at lanes [0,7)
    ("db3", 1),
    ("smask", 1),       # 1.0 at lanes [0,4), else 0.0
)
_OFF = {}
_row = 0
for _name, _rows in _LAYOUT:
    _OFF[_name] = _row
    _row += _r8(_rows)
SLAB_ROWS = _row        # 592 rows -> ~296 KiB, VMEM-resident across the grid


def _vae_kernel(xe_ref, slab_ref, out_ref, mu_ref, lv_ref):
    """One batch tile of the VAE forward. All params come from one VMEM slab."""
    xe = xe_ref[...]                                            # (tb, 16)

    # full-lane slices into the resident weight slab (no per-layer DMAs,
    # no 0:64 lane slicing -> every matmul RHS is a natural (K,128) tile)
    w1 = slab_ref[_OFF["w1"]:_OFF["w1"] + XE_LANES, :]          # (16, 128)
    b1 = slab_ref[_OFF["b1"]:_OFF["b1"] + 1, :]
    w2 = slab_ref[_OFF["w2"]:_OFF["w2"] + LANE_W, :]            # (128, 128)
    b2 = slab_ref[_OFF["b2"]:_OFF["b2"] + 1, :]
    wh = slab_ref[_OFF["wh"]:_OFF["wh"] + LANE_W, :]            # (128, 128)
    bh = slab_ref[_OFF["bh"]:_OFF["bh"] + 1, :]
    dw1 = slab_ref[_OFF["dw1"]:_OFF["dw1"] + LATENT_DIM, :]     # (5, 128)
    db1 = slab_ref[_OFF["db1"]:_OFF["db1"] + 1, :]
    dw2 = slab_ref[_OFF["dw2"]:_OFF["dw2"] + LANE_W, :]         # (128, 128)
    db2 = slab_ref[_OFF["db2"]:_OFF["db2"] + 1, :]
    dw3 = slab_ref[_OFF["dw3"]:_OFF["dw3"] + LANE_W, :]         # (128, 128)
    db3 = slab_ref[_OFF["db3"]:_OFF["db3"] + 1, :]
    smask = slab_ref[_OFF["smask"]:_OFF["smask"] + 1, 0:INPUT_DIM]  # (1, 7)

    # ---- encoder: Linear -> ReLU -> Linear -> ReLU ----
    # x lives at lanes [8,15) of xe; w1 rows outside [8,15) are zero, so the
    # eps lanes contribute nothing.  All activations stay (tb, 128).
    h = jnp.maximum(jnp.dot(xe, w1, preferred_element_type=jnp.float32) + b1, 0.0)
    h = jnp.maximum(jnp.dot(h, w2, preferred_element_type=jnp.float32) + b2, 0.0)

    # ---- fused mu|logvar head: mu at lanes [0,5), logvar at lanes [5,10) ----
    heads = jnp.dot(h, wh, preferred_element_type=jnp.float32) + bh   # (tb, 128)
    mu = heads[:, 0:LATENT_DIM]                                       # lane-0 aligned
    logvar = heads[:, LATENT_DIM:2 * LATENT_DIM]
    mu_ref[...] = mu
    lv_ref[...] = logvar

    # ---- reparameterize: z = mu + eps * exp(0.5 * logvar) ----
    eps = xe[:, EPS_LANE:EPS_LANE + LATENT_DIM]                       # lane-0 aligned
    z = mu + eps * jnp.exp(0.5 * logvar)                              # (tb, 5)

    # ---- decoder: Linear -> ReLU -> Linear -> ReLU -> Linear ----
    d = jnp.maximum(jnp.dot(z, dw1, preferred_element_type=jnp.float32) + db1, 0.0)
    d = jnp.maximum(jnp.dot(d, dw2, preferred_element_type=jnp.float32) + db2, 0.0)
    o = jnp.dot(d, dw3, preferred_element_type=jnp.float32) + db3     # valid lanes [0,7)

    # out[:, :4] = sigmoid(out[:, :4])  (applied to the DECODER OUTPUT)
    o7 = o[:, 0:INPUT_DIM]
    out_ref[...] = jnp.where(smask > 0.5, jax.nn.sigmoid(o7), o7)


def pack_params(params):
    """Pack the 14 (W, b) tensors + sigmoid mask into one (SLAB_ROWS, 128) slab.

    NOTE: the zero padding of this slab is load-bearing.  Zero rows/columns of
    the weight blocks are what mask out (a) the eps lanes of the packed input
    in layer 1, (b) the unused upper 64 lanes of every activation, and (c)
    everything outside the mu/logvar/out lanes.  Writing nonzero values into
    the padding silently corrupts the result.
    """
    (w1, b1, w2, b2, wmu, bmu, wlv, blv,
     dw1, db1, dw2, db2, dw3, db3) = params
    slab = jnp.zeros((SLAB_ROWS, LANE_W), jnp.float32)

    def put(s, name, arr, row=0, col=0):
        arr = jnp.asarray(arr, jnp.float32)
        if arr.ndim == 1:
            arr = arr[None, :]
        r = _OFF[name] + row
        return s.at[r:r + arr.shape[0], col:col + arr.shape[1]].set(arr)

    slab = put(slab, "w1", w1, row=X_LANE)                        # rows 8..14
    slab = put(slab, "b1", b1)
    slab = put(slab, "w2", w2)
    slab = put(slab, "b2", b2)
    slab = put(slab, "wh", jnp.concatenate([wmu, wlv], axis=1))   # lanes 0..9
    slab = put(slab, "bh", jnp.concatenate([bmu, blv], axis=1))
    slab = put(slab, "dw1", dw1)
    slab = put(slab, "db1", db1)
    slab = put(slab, "dw2", dw2)
    slab = put(slab, "db2", db2)
    slab = put(slab, "dw3", dw3)
    slab = put(slab, "db3", db3)
    slab = put(slab, "smask", jnp.ones((1, 4), jnp.float32))
    return slab


def _choose_tile(batch):
    """Adaptive batch tile: >=2 grid steps when possible (v7x 2-TC sharding),
    tiles capped at MAX_TILE_B, padding waste kept small."""
    rows = _r8(max(batch, 8))
    min_steps = 2 if rows >= 16 else 1
    steps = max(min_steps, _cdiv(rows, MAX_TILE_B))
    tile_b = min(MAX_TILE_B, _r8(_cdiv(rows, steps)))
    padded = _cdiv(batch, tile_b) * tile_b
    return tile_b, padded


@jax.jit
def vae_forward(x, eps, slab):
    """x: (B, 7) f32, eps: (B, 5) f32, slab: packed params.
    Returns (out (B,7), mu (B,5), logvar (B,5))."""
    batch = x.shape[0]
    tile_b, padded = _choose_tile(batch)
    grid = (padded // tile_b,)

    # pack x and eps into one lane-16 input stream (also absorbs batch padding)
    xe = jnp.zeros((padded, XE_LANES), jnp.float32)
    xe = xe.at[:batch, EPS_LANE:EPS_LANE + LATENT_DIM].set(eps.astype(jnp.float32))
    xe = xe.at[:batch, X_LANE:X_LANE + INPUT_DIM].set(x.astype(jnp.float32))

    flops = 2 * padded * LANE_W * (XE_LANES + LATENT_DIM + 4 * LANE_W)
    out, mu, logvar = pl.pallas_call(
        _vae_kernel,
        out_shape=(
            jax.ShapeDtypeStruct((padded, INPUT_DIM), jnp.float32),
            jax.ShapeDtypeStruct((padded, LATENT_DIM), jnp.float32),
            jax.ShapeDtypeStruct((padded, LATENT_DIM), jnp.float32),
        ),
        grid_spec=pltpu.PrefetchScalarGridSpec(
            num_scalar_prefetch=0,
            grid=grid,
            in_specs=[
                pl.BlockSpec((tile_b, XE_LANES), lambda i: (i, 0)),
                # whole weight slab, constant index -> DMA'd once, VMEM-resident
                pl.BlockSpec((SLAB_ROWS, LANE_W), lambda i: (0, 0)),
            ],
            out_specs=[
                pl.BlockSpec((tile_b, INPUT_DIM), lambda i: (i, 0)),
                pl.BlockSpec((tile_b, LATENT_DIM), lambda i: (i, 0)),
                pl.BlockSpec((tile_b, LATENT_DIM), lambda i: (i, 0)),
            ],
        ),
        compiler_params=pltpu.CompilerParams(
            dimension_semantics=("parallel",),        # shards batch over v7x's 2 TCs
            vmem_limit_bytes=32 * 1024 * 1024,        # lets v5e match v6e/v7x tiles
        ),
        cost_estimate=pl.CostEstimate(
            flops=flops,
            transcendentals=padded * (LATENT_DIM + 4),
            bytes_accessed=4 * (padded * XE_LANES + SLAB_ROWS * LANE_W
                                + padded * (INPUT_DIM + 2 * LATENT_DIM)),
        ),
    )(xe, slab)

    if padded != batch:
        out, mu, logvar = out[:batch], mu[:batch], logvar[:batch]
    return out, mu, logvar


def _init_linear(key, fan_in, fan_out):
    """PyTorch nn.Linear-style init: U(-1/sqrt(fan_in), 1/sqrt(fan_in)).
    Weight shape (fan_in, fan_out); bias shape (1, fan_out)."""
    kw, kb = jax.random.split(key)
    bound = 1.0 / jnp.sqrt(jnp.float32(fan_in))
    w = jax.random.uniform(kw, (fan_in, fan_out), jnp.float32, -bound, bound)
    b = jax.random.uniform(kb, (1, fan_out), jnp.float32, -bound, bound)
    return w, b


def init_vae_params(key):
    keys = jax.random.split(key, 7)
    w1, b1 = _init_linear(keys[0], INPUT_DIM, HIDDEN_DIM1)
    w2, b2 = _init_linear(keys[1], HIDDEN_DIM1, HIDDEN_DIM2)
    wmu, bmu = _init_linear(keys[2], HIDDEN_DIM2, LATENT_DIM)
    wlv, blv = _init_linear(keys[3], HIDDEN_DIM2, LATENT_DIM)
    dw1, db1 = _init_linear(keys[4], LATENT_DIM, HIDDEN_DIM1)
    dw2, db2 = _init_linear(keys[5], HIDDEN_DIM1, HIDDEN_DIM2)
    dw3, db3 = _init_linear(keys[6], HIDDEN_DIM2, INPUT_DIM)
    return (w1, b1, w2, b2, wmu, bmu, wlv, blv,
            dw1, db1, dw2, db2, dw3, db3)


def _reference_forward(x, eps, params):
    """Pure-JAX reference (uses the unpacked params)."""
    (w1, b1, w2, b2, wmu, bmu, wlv, blv,
     dw1, db1, dw2, db2, dw3, db3) = params
    h = jnp.maximum(x @ w1 + b1, 0.0)
    h = jnp.maximum(h @ w2 + b2, 0.0)
    mu = h @ wmu + bmu
    logvar = h @ wlv + blv
    z = mu + eps * jnp.exp(0.5 * logvar)
    d = jnp.maximum(z @ dw1 + db1, 0.0)
    d = jnp.maximum(d @ dw2 + db2, 0.0)
    o = d @ dw3 + db3
    o = o.at[:, :4].set(jax.nn.sigmoid(o[:, :4]))
    return o, mu, logvar


if __name__ == "__main__":
    key = jax.random.PRNGKey(0)
    k_params, k_x, k_eps, k_x2, k_eps2 = jax.random.split(key, 5)

    params = init_vae_params(k_params)
    slab = pack_params(params)

    # --- small deterministic check (single grid step) ---
    batch = 8
    x = jax.random.normal(k_x, (batch, INPUT_DIM), jnp.float32)
    # eps ~ N(0,1) drawn in the wrapper (torch.randn_like semantics, fixed seed)
    eps = jax.random.normal(k_eps, (batch, LATENT_DIM), jnp.float32)
    out, mu, logvar = vae_forward(x, eps, slab)
    jax.block_until_ready((out, mu, logvar))

    ro, rm, rl = _reference_forward(x, eps, params)
    assert jnp.allclose(out, ro, atol=3e-5, rtol=3e-5)
    assert jnp.allclose(mu, rm, atol=3e-5, rtol=3e-5)
    assert jnp.allclose(logvar, rl, atol=3e-5, rtol=3e-5)

    # --- larger, non-tile-multiple batch: exercises the 2-step "parallel"
    #     grid (both v7x TensorCores) and the padding path ---
    batch2 = 200
    x2 = jax.random.normal(k_x2, (batch2, INPUT_DIM), jnp.float32)
    eps2 = jax.random.normal(k_eps2, (batch2, LATENT_DIM), jnp.float32)
    out2, mu2, lv2 = vae_forward(x2, eps2, slab)
    jax.block_until_ready((out2, mu2, lv2))

    ro2, rm2, rl2 = _reference_forward(x2, eps2, params)
    assert jnp.allclose(out2, ro2, atol=3e-5, rtol=3e-5)
    assert jnp.allclose(mu2, rm2, atol=3e-5, rtol=3e-5)
    assert jnp.allclose(lv2, rl2, atol=3e-5, rtol=3e-5)

    print("KERNEL_OK")
</pallas_src>

<mosaic_0001>
module attributes {stable_mosaic.version = 11 : i64} {
  func.func @_vae_kernel(%arg0: i32, %arg1: memref<8x16xf32, #tpu.memory_space<vmem>>, %arg2: memref<592x128xf32, #tpu.memory_space<vmem>>, %arg3: memref<8x7xf32, #tpu.memory_space<vmem>>, %arg4: memref<8x5xf32, #tpu.memory_space<vmem>>, %arg5: memref<8x5xf32, #tpu.memory_space<vmem>>) attributes {dimension_semantics = [#tpu.dimension_semantics<parallel>], iteration_bounds = array<i64: 1>, scalar_prefetch = 0 : i64, scratch_operands = 0 : i64, tpu.core_type = #tpu.core_type<tc>, window_params = [{transform_indices = @transform_0, window_bounds = array<i64: 8, 16>}, {pipeline_mode = #tpu.pipeline_mode<synchronous>, transform_indices = @transform_1, window_bounds = array<i64: 592, 128>}, {transform_indices = @transform_2, window_bounds = array<i64: 8, 7>}, {transform_indices = @transform_3, window_bounds = array<i64: 8, 5>}, {transform_indices = @transform_4, window_bounds = array<i64: 8, 5>}]} {
    %c0 = arith.constant 0 : index
    %c0_0 = arith.constant 0 : index
    %0 = vector.load %arg1[%c0, %c0_0] : memref<8x16xf32, #tpu.memory_space<vmem>>, vector<8x16xf32>
    %c0_1 = arith.constant 0 : index
    %c0_2 = arith.constant 0 : index
    %1 = vector.load %arg2[%c0_1, %c0_2] : memref<592x128xf32, #tpu.memory_space<vmem>>, vector<16x128xf32>
    %c16 = arith.constant 16 : index
    %c0_3 = arith.constant 0 : index
    %2 = vector.load %arg2[%c16, %c0_3] : memref<592x128xf32, #tpu.memory_space<vmem>>, vector<1x128xf32>
    %c24 = arith.constant 24 : index
    %c0_4 = arith.constant 0 : index
    %3 = vector.load %arg2[%c24, %c0_4] : memref<592x128xf32, #tpu.memory_space<vmem>>, vector<128x128xf32>
    %c152 = arith.constant 152 : index
    %c0_5 = arith.constant 0 : index
    %4 = vector.load %arg2[%c152, %c0_5] : memref<592x128xf32, #tpu.memory_space<vmem>>, vector<1x128xf32>
    %c160 = arith.constant 160 : index
    %c0_6 = arith.constant 0 : index
    %5 = vector.load %arg2[%c160, %c0_6] : memref<592x128xf32, #tpu.memory_space<vmem>>, vector<128x128xf32>
    %c288 = arith.constant 288 : index
    %c0_7 = arith.constant 0 : index
    %6 = vector.load %arg2[%c288, %c0_7] : memref<592x128xf32, #tpu.memory_space<vmem>>, vector<1x128xf32>
    %c296 = arith.constant 296 : index
    %c0_8 = arith.constant 0 : index
    %7 = vector.load %arg2[%c296, %c0_8] : memref<592x128xf32, #tpu.memory_space<vmem>>, vector<5x128xf32>
    %c304 = arith.constant 304 : index
    %c0_9 = arith.constant 0 : index
    %8 = vector.load %arg2[%c304, %c0_9] : memref<592x128xf32, #tpu.memory_space<vmem>>, vector<1x128xf32>
    %c312 = arith.constant 312 : index
    %c0_10 = arith.constant 0 : index
    %9 = vector.load %arg2[%c312, %c0_10] : memref<592x128xf32, #tpu.memory_space<vmem>>, vector<128x128xf32>
    %c440 = arith.constant 440 : index
    %c0_11 = arith.constant 0 : index
    %10 = vector.load %arg2[%c440, %c0_11] : memref<592x128xf32, #tpu.memory_space<vmem>>, vector<1x128xf32>
    %c448 = arith.constant 448 : index
    %c0_12 = arith.constant 0 : index
    %11 = vector.load %arg2[%c448, %c0_12] : memref<592x128xf32, #tpu.memory_space<vmem>>, vector<128x128xf32>
    %c576 = arith.constant 576 : index
    %c0_13 = arith.constant 0 : index
    %12 = vector.load %arg2[%c576, %c0_13] : memref<592x128xf32, #tpu.memory_space<vmem>>, vector<1x128xf32>
    %c584 = arith.constant 584 : index
    %c0_14 = arith.constant 0 : index
    %13 = vector.load %arg2[%c584, %c0_14] : memref<592x128xf32, #tpu.memory_space<vmem>>, vector<1x7xf32>
    %cst = arith.constant dense<0.000000e+00> : vector<8x128xf32>
    %14 = tpu.matmul %0, %1, %cst {dimension_numbers = #tpu.dot_dimension_numbers<[1], [0], [0], [1], [0, 0, 1, 1], [], []>} : vector<8x16xf32>, vector<16x128xf32>, vector<8x128xf32> -> vector<8x128xf32>
    %15 = vector.broadcast %2 : vector<1x128xf32> to vector<8x128xf32>
    %16 = arith.addf %14, %15 : vector<8x128xf32>
    %cst_15 = arith.constant 0.000000e+00 : f32
    %17 = vector.broadcast %cst_15 : f32 to vector<8x128xf32>
    %18 = arith.maximumf %16, %17 : vector<8x128xf32>
    %cst_16 = arith.constant dense<0.000000e+00> : vector<8x128xf32>
    %19 = tpu.matmul %18, %3, %cst_16 {dimension_numbers = #tpu.dot_dimension_numbers<[1], [0], [0], [1], [0, 0, 1, 1], [], []>} : vector<8x128xf32>, vector<128x128xf32>, vector<8x128xf32> -> vector<8x128xf32>
    %20 = vector.broadcast %4 : vector<1x128xf32> to vector<8x128xf32>
    %21 = arith.addf %19, %20 : vector<8x128xf32>
    %cst_17 = arith.constant 0.000000e+00 : f32
    %22 = vector.broadcast %cst_17 : f32 to vector<8x128xf32>
    %23 = arith.maximumf %21, %22 : vector<8x128xf32>
    %cst_18 = arith.constant dense<0.000000e+00> : vector<8x128xf32>
    %24 = tpu.matmul %23, %5, %cst_18 {dimension_numbers = #tpu.dot_dimension_numbers<[1], [0], [0], [1], [0, 0, 1, 1], [], []>} : vector<8x128xf32>, vector<128x128xf32>, vector<8x128xf32> -> vector<8x128xf32>
    %25 = vector.broadcast %6 : vector<1x128xf32> to vector<8x128xf32>
    %26 = arith.addf %24, %25 : vector<8x128xf32>
    %27 = vector.extract_strided_slice %26 {offsets = [0, 0], sizes = [8, 5], strides = [1, 1]} : vector<8x128xf32> to vector<8x5xf32>
    %28 = vector.extract_strided_slice %26 {offsets = [0, 5], sizes = [8, 5], strides = [1, 1]} : vector<8x128xf32> to vector<8x5xf32>
    %c0_19 = arith.constant 0 : index
    %c0_20 = arith.constant 0 : index
    %29 = vector.load %arg4[%c0_19, %c0_20] : memref<8x5xf32, #tpu.memory_space<vmem>>, vector<8x5xf32>
    tpu.vector_store %arg4[%c0_19, %c0_20], %27 {strides = array<i32>} : memref<8x5xf32, #tpu.memory_space<vmem>>, vector<8x5xf32>,
    %c0_21 = arith.constant 0 : index
    %c0_22 = arith.constant 0 : index
    %30 = vector.load %arg5[%c0_21, %c0_22] : memref<8x5xf32, #tpu.memory_space<vmem>>, vector<8x5xf32>
    tpu.vector_store %arg5[%c0_21, %c0_22], %28 {strides = array<i32>} : memref<8x5xf32, #tpu.memory_space<vmem>>, vector<8x5xf32>,
    %31 = vector.extract_strided_slice %0 {offsets = [0, 0], sizes = [8, 5], strides = [1, 1]} : vector<8x16xf32> to vector<8x5xf32>
    %cst_23 = arith.constant 5.000000e-01 : f32
    %32 = vector.broadcast %cst_23 : f32 to vector<8x5xf32>
    %33 = arith.mulf %32, %28 : vector<8x5xf32>
    %34 = math.exp %33 : vector<8x5xf32>
    %35 = arith.mulf %31, %34 : vector<8x5xf32>
    %36 = arith.addf %27, %35 : vector<8x5xf32>
    %cst_24 = arith.constant dense<0.000000e+00> : vector<8x128xf32>
    %37 = tpu.matmul %36, %7, %cst_24 {dimension_numbers = #tpu.dot_dimension_numbers<[1], [0], [0], [1], [0, 0, 1, 1], [], []>} : vector<8x5xf32>, vector<5x128xf32>, vector<8x128xf32> -> vector<8x128xf32>
    %38 = vector.broadcast %8 : vector<1x128xf32> to vector<8x128xf32>
    %39 = arith.addf %37, %38 : vector<8x128xf32>
    %cst_25 = arith.constant 0.000000e+00 : f32
    %40 = vector.broadcast %cst_25 : f32 to vector<8x128xf32>
    %41 = arith.maximumf %39, %40 : vector<8x128xf32>
    %cst_26 = arith.constant dense<0.000000e+00> : vector<8x128xf32>
    %42 = tpu.matmul %41, %9, %cst_26 {dimension_numbers = #tpu.dot_dimension_numbers<[1], [0], [0], [1], [0, 0, 1, 1], [], []>} : vector<8x128xf32>, vector<128x128xf32>, vector<8x128xf32> -> vector<8x128xf32>
    %43 = vector.broadcast %10 : vector<1x128xf32> to vector<8x128xf32>
    %44 = arith.addf %42, %43 : vector<8x128xf32>
    %cst_27 = arith.constant 0.000000e+00 : f32
    %45 = vector.broadcast %cst_27 : f32 to vector<8x128xf32>
    %46 = arith.maximumf %44, %45 : vector<8x128xf32>
    %cst_28 = arith.constant dense<0.000000e+00> : vector<8x128xf32>
    %47 = tpu.matmul %46, %11, %cst_28 {dimension_numbers = #tpu.dot_dimension_numbers<[1], [0], [0], [1], [0, 0, 1, 1], [], []>} : vector<8x128xf32>, vector<128x128xf32>, vector<8x128xf32> -> vector<8x128xf32>
    %48 = vector.broadcast %12 : vector<1x128xf32> to vector<8x128xf32>
    %49 = arith.addf %47, %48 : vector<8x128xf32>
    %50 = vector.extract_strided_slice %49 {offsets = [0, 0], sizes = [8, 7], strides = [1, 1]} : vector<8x128xf32> to vector<8x7xf32>
    %cst_29 = arith.constant 5.000000e-01 : f32
    %51 = vector.broadcast %cst_29 : f32 to vector<1x7xf32>
    %52 = arith.cmpf ogt, %13, %51 : vector<1x7xf32>
    %53 = arith.negf %50 : vector<8x7xf32>
    %54 = math.exp %53 : vector<8x7xf32>
    %cst_30 = arith.constant 1.000000e+00 : f32
    %55 = vector.broadcast %cst_30 : f32 to vector<8x7xf32>
    %56 = arith.addf %55, %54 : vector<8x7xf32>
    %57 = arith.divf %55, %56 : vector<8x7xf32>
    %58 = vector.shape_cast %52 : vector<1x7xi1> to vector<1x7xi1>
    %59 = vector.broadcast %58 : vector<1x7xi1> to vector<8x7xi1>
    %60 = arith.select %59, %57, %50 : vector<8x7xi1>, vector<8x7xf32>
    %c0_31 = arith.constant 0 : index
    %c0_32 = arith.constant 0 : index
    %61 = vector.load %arg3[%c0_31, %c0_32] : memref<8x7xf32, #tpu.memory_space<vmem>>, vector<8x7xf32>
    tpu.vector_store %arg3[%c0_31, %c0_32], %60 {strides = array<i32>} : memref<8x7xf32, #tpu.memory_space<vmem>>, vector<8x7xf32>,
    return
  }
  func.func @transform_0(%arg0: i32) -> (i32, i32) {
    %c0_i32 = arith.constant 0 : i32
    %c0_i32_0 = arith.constant 0 : i32
    return %arg0, %c0_i32 : i32, i32
  }
  func.func @transform_1(%arg0: i32) -> (i32, i32) {
    %c0_i32 = arith.constant 0 : i32
    %c0_i32_0 = arith.constant 0 : i32
    %c0_i32_1 = arith.constant 0 : i32
    return %c0_i32, %c0_i32_0 : i32, i32
  }
  func.func @transform_2(%arg0: i32) -> (i32, i32) {
    %c0_i32 = arith.constant 0 : i32
    %c0_i32_0 = arith.constant 0 : i32
    return %arg0, %c0_i32 : i32, i32
  }
  func.func @transform_3(%arg0: i32) -> (i32, i32) {
    %c0_i32 = arith.constant 0 : i32
    %c0_i32_0 = arith.constant 0 : i32
    return %arg0, %c0_i32 : i32, i32
  }
  func.func @transform_4(%arg0: i32) -> (i32, i32) {
    %c0_i32 = arith.constant 0 : i32
    %c0_i32_0 = arith.constant 0 : i32
    return %arg0, %c0_i32 : i32, i32
  }
}

</mosaic_0001>

<bundles_post_ra>
// kernel: vae_forward.1
= control target key start
LH: loop header
LB: loop body
LE: loop exit
PB: predicated region body
PF: predicated region fallthrough
CT: control target
= control target key end

     0   :  { %10 = vsyncpa [#allocation3], 0  ;;  %s1111_s0 = inlined_call_operand.vmem [shape: f32[8,16], index: 0, kind: input, shape index: {}]   ;;  %s1112_s1 = inlined_call_operand.hbm [shape: f32[592,128], index: 1, kind: input, shape index: {}]   ;;  %s1113_s2 = inlined_call_operand.hbm [shape: f32[8,7], index: 2, kind: output, shape index: {0}]   ;;  %s1114_s3 = inlined_call_operand.hbm [shape: f32[8,5], index: 3, kind: output, shape index: {1}]   ;;  %s1115_s4 = inlined_call_operand.hbm [shape: f32[8,5], index: 4, kind: output, shape index: {2}]  }
   0x1   :  { %11 = vsyncpa [#allocation4], 0 }
   0x2   :  { %12 = vsyncpa [#allocation7], 0  ;;  %s975_s15 = smov [#allocation2]  }
   0x3   :  { %s20_s16 = sshll.u32 %s975_s15, 4  ;;  %s21_s16 = int_to_ptr.vmem [resolvable:$true] %s20_s16 }
   0x4   :  { %s897_s17 = scalar_lea.vmem %s21_s16, 9472  ;;  %p902_p1 = scmp.lt.s32.totalorder %s21_s16, %s21_s16 }
   0x5   :  { %p898_p0 = scmp.ne.s32.totalorder %s21_s16, %s897_s17  ;;  %p903_p2 = scmp.lt.s32.totalorder %s897_s17, %s897_s17 }
   0x7   :  { %p904_p3 = por %p903_p2, %p902_p1 }
   0x9   :  { %p905_p4 = pnand %p904_p3, %p898_p0 }
   0xb   :  { %908 = shalt.err (!%p905_p4)
}
   0xc   :  { %s976_s18 = smov 128   ;;  %s977_s19 = smov 8  }
   0xd   :  { %26 = dma.hbm_to_vmem [thread:$0]  %s1112_s1, 9472, %s21_s16, [#allocation3], %s976_s18, %s976_s18, %s977_s19  }
   0xe   :  { %969 = dma.done.wait [#allocation3], 9472  }
   0xf   :  { %970 = vsyncadd [#allocation3], 4294957824  ;;  %v978_v0 = vmov 0.0   ;;  %vm979_vm0 = vmmov 0   ;;  %v32_v1 = vld [vmem:[#allocation2 + $0x8] sm:$0xff]  ;;  %v31_v2 = vld [vmem:[#allocation2] sm:$0xff] }
  0x10   :  { %721 = vmatprep.subr.mxu0 %v978_v0  ;;  %725 = vmatprep.mubr.msk.f32.mxu0 %vm979_vm0, %v978_v0  ;;  %v1022_v3 = vld [vmem:[%s1111_s0] sm:$0xff]  ;;  %vm109_vm1 = vcmask 130048   ;;  %v49_v4 = vld [vmem:[#allocation2 + $0x90] sm:$0xff]  ;;  %v48_v5 = vld [vmem:[#allocation2 + $0x88] sm:$0xff]  ;;  %vm333_vm2 = vcmask 39936   ;;  %vm356_vm3 = vcmask 1044480  }
  0x11   :  { %728 = vmatprep.subr.mxu1 %v978_v0  ;;  %760 = vmatprep.mubr.msk.f32.mxu1 %vm979_vm0, %v978_v0  ;;  %v47_v6 = vld [vmem:[#allocation2 + $0x80] sm:$0xff]  ;;  %v46_v7 = vld [vmem:[#allocation2 + $0x78] sm:$0xff]  ;;  %v45_v8 = vld [vmem:[#allocation2 + $0x70] sm:$0xff]  ;;  %s980_s0 = smov 123   ;;  %s981_s1 = smov [#allocation6]  }
  0x12   :  { %722 = vmatpush3.msra.mxu0 %v32_v1  ;;  %729 = vmatpush3.msra.mxu1 %v49_v4  ;;  %v44_v9 = vld [vmem:[#allocation2 + $0x68] sm:$0xff]  ;;  %v43_v10 = vld [vmem:[#allocation2 + $0x60] sm:$0xff]  ;;  %v42_v11 = vld [vmem:[#allocation2 + $0x58] sm:$0xff]  ;;  %s612_s24 = sshll.u32 %s981_s1, 4  ;;  %s613_s24 = int_to_ptr.vmem [resolvable:$true] %s612_s24 }
  0x13   :  { %723 = vmatprep.subr.mxu0 %v978_v0  ;;  %730 = vmatprep.subr.mxu1 %v978_v0  ;;  %v41_v12 = vld [vmem:[#allocation2 + $0x50] sm:$0xff]  ;;  %v40_v13 = vld [vmem:[#allocation2 + $0x48] sm:$0xff]  ;;  %v39_v14 = vld [vmem:[#allocation2 + $0x40] sm:$0xff]  ;;  %s909_s25 = scalar_lea.vmem %s613_s24, 128  ;;  %p914_p6 = scmp.lt.s32.totalorder %s613_s24, %s613_s24 }
  0x14   :  { %724 = vmatpush3.msra.mxu0 %v31_v2  ;;  %731 = vmatpush3.msra.mxu1 %v48_v5  ;;  %v38_v15 = vld [vmem:[#allocation2 + $0x38] sm:$0xff]  ;;  %v37_v16 = vld [vmem:[#allocation2 + $0x30] sm:$0xff]  ;;  %v36_v17 = vld [vmem:[#allocation2 + $0x28] sm:$0xff]  ;;  %p910_p5 = scmp.ne.s32.totalorder %s613_s24, %s909_s25  ;;  %p915_p7 = scmp.lt.s32.totalorder %s909_s25, %s909_s25 }
  0x15   :  { %726 = vmatmul.mubr.msk.f32.vlgmr.msra.gmra.mxu0 %vm109_vm1, %v1022_v3  ;;  %732 = vmatprep.subr.mxu1 %v978_v0  ;;  %v35_v18 = vld [vmem:[#allocation2 + $0x20] sm:$0xff]  ;;  %v34_v19 = vld [vmem:[#allocation2 + $0x18] sm:$0xff]  ;;  %v65_v21 = vld [vmem:[#allocation2 + $0x110] sm:$0xff] }
  0x16   :  { %763 = vmatprep.subr.mxu0 %v978_v0  ;;  %733 = vmatpush3.msra.mxu1 %v47_v6  ;;  %v66_v20 = vld [vmem:[#allocation2 + $0x118] sm:$0xff]  ;;  %v64_v22 = vld [vmem:[#allocation2 + $0x108] sm:$0xff]  ;;  %v63_v23 = vld [vmem:[#allocation2 + $0x100] sm:$0xff]  ;;  %p916_p8 = por %p915_p7, %p914_p6 }
  0x17   :  { %795 = vmatprep.mubr.msk.f32.mxu0 %vm979_vm0, %v978_v0  ;;  %734 = vmatprep.subr.mxu1 %v978_v0  ;;  %v62_v24 = vld [vmem:[#allocation2 + $0xf8] sm:$0xff]  ;;  %v61_v25 = vld [vmem:[#allocation2 + $0xf0] sm:$0xff]  ;;  %v60_v26 = vld [vmem:[#allocation2 + $0xe8] sm:$0xff] }
  0x18   :  { %735 = vmatpush3.msra.mxu1 %v46_v7  ;;  %764 = vmatpush3.msra.mxu0 %v66_v20  ;;  %v59_v27 = vld [vmem:[#allocation2 + $0xe0] sm:$0xff]  ;;  %v58_v28 = vld [vmem:[#allocation2 + $0xd8] sm:$0xff]  ;;  %v57_v29 = vld [vmem:[#allocation2 + $0xd0] sm:$0xff]  ;;  %p917_p9 = pnand %p916_p8, %p910_p5 }
  0x19   :  { %736 = vmatprep.subr.mxu1 %v978_v0  ;;  %765 = vmatprep.subr.mxu0 %v978_v0  ;;  %v56_v30 = vld [vmem:[#allocation2 + $0xc8] sm:$0xff]  ;;  %v55_v31 = vld [vmem:[#allocation2 + $0xc0] sm:$0xff]  ;;  %v54_v32 = vld [vmem:[#allocation2 + $0xb8] sm:$0xff] }
  0x1a   :  { %737 = vmatpush3.msra.mxu1 %v45_v8  ;;  %766 = vmatpush3.msra.mxu0 %v65_v21  ;;  %v638_v33 = vld [vmem:[#allocation2 + $0x10] ss:$0 sm:$0xff]  ;;  %v52_v39 = vld [vmem:[#allocation2 + $0xa8] sm:$0xff]  ;;  %v51_v40 = vld [vmem:[#allocation2 + $0xa0] sm:$0xff] }
  0x1b   :  { %738 = vmatprep.subr.mxu1 %v978_v0  ;;  %767 = vmatprep.subr.mxu0 %v978_v0  ;;  %v53_v38 = vld [vmem:[#allocation2 + $0xb0] sm:$0xff]  ;;  %v640_v41 = vld [vmem:[#allocation2 + $0x98] ss:$0 sm:$0xff]  ;;  %v641_v46 = vld [vmem:[#allocation2 + $0x120] ss:$0 sm:$0xff] }
  0x1c   :  { %739 = vmatpush3.msra.mxu1 %v44_v9  ;;  %768 = vmatpush3.msra.mxu0 %v64_v22  ;;  %v68_v52 = vld [vmem:[#allocation2 + $0x128] sm:$0x1f]  ;;  %v85_v53 = vld [vmem:[#allocation2 + $0x1b0] sm:$0xff]  ;;  %v83_v55 = vld [vmem:[#allocation2 + $0x1a0] sm:$0xff] }
  0x1d   :  { %740 = vmatprep.subr.mxu1 %v978_v0  ;;  %769 = vmatprep.subr.mxu0 %v978_v0  ;;  %v84_v54 = vld [vmem:[#allocation2 + $0x1a8] sm:$0xff]  ;;  %v82_v56 = vld [vmem:[#allocation2 + $0x198] sm:$0xff]  ;;  %v81_v57 = vld [vmem:[#allocation2 + $0x190] sm:$0xff] }
  0x1e   :  { %741 = vmatpush3.msra.mxu1 %v43_v10  ;;  %770 = vmatpush3.msra.mxu0 %v63_v23  ;;  %v80_v59 = vld [vmem:[#allocation2 + $0x188] sm:$0xff]  ;;  %v79_v60 = vld [vmem:[#allocation2 + $0x180] sm:$0xff]  ;;  %v78_v61 = vld [vmem:[#allocation2 + $0x178] sm:$0xff] }
  0x1f   :  { %742 = vmatprep.subr.mxu1 %v978_v0  ;;  %771 = vmatprep.subr.mxu0 %v978_v0  ;;  %v77_v62 = vld [vmem:[#allocation2 + $0x170] sm:$0xff]  ;;  %v76_v63 = vld [vmem:[#allocation2 + $0x168] sm:$0xff]  ;;  %v75_v1 = vld [vmem:[#allocation2 + $0x160] sm:$0xff] }
  0x20   :  { %743 = vmatpush3.msra.mxu1 %v42_v11  ;;  %772 = vmatpush3.msra.mxu0 %v62_v24  ;;  %v74_v2 = vld [vmem:[#allocation2 + $0x158] sm:$0xff]  ;;  %v73_v4 = vld [vmem:[#allocation2 + $0x150] sm:$0xff]  ;;  %v72_v9 = vld [vmem:[#allocation2 + $0x148] sm:$0xff] }
  0x21   :  { %744 = vmatprep.subr.mxu1 %v978_v0  ;;  %773 = vmatprep.subr.mxu0 %v978_v0  ;;  %v71_v10 = vld [vmem:[#allocation2 + $0x140] sm:$0xff]  ;;  %v70_v11 = vld [vmem:[#allocation2 + $0x138] sm:$0xff]  ;;  %v93_v20 = vld [vmem:[#allocation2 + $0x1f0] sm:$0xff] }
  0x22   :  { %745 = vmatpush3.msra.mxu1 %v41_v12  ;;  %774 = vmatpush3.msra.mxu0 %v61_v25  ;;  %v101_v12 = vld [vmem:[#allocation2 + $0x230] sm:$0xff]  ;;  %v92_v21 = vld [vmem:[#allocation2 + $0x1e8] sm:$0xff]  ;;  %v91_v22 = vld [vmem:[#allocation2 + $0x1e0] sm:$0xff] }
  0x23   :  { %746 = vmatprep.subr.mxu1 %v978_v0  ;;  %775 = vmatprep.subr.mxu0 %v978_v0  ;;  %v90_v23 = vld [vmem:[#allocation2 + $0x1d8] sm:$0xff]  ;;  %v642_v24 = vld [vmem:[#allocation2 + $0x130] ss:$0 sm:$0xff] }
  0x24   :  { %747 = vmatpush3.msra.mxu1 %v40_v13  ;;  %776 = vmatpush3.msra.mxu0 %v60_v26  ;;  %v100_v13 = vld [vmem:[#allocation2 + $0x228] sm:$0xff] }
  0x25   :  { %748 = vmatprep.subr.mxu1 %v978_v0  ;;  %777 = vmatprep.subr.mxu0 %v978_v0 }
  0x26   :  { %749 = vmatpush3.msra.mxu1 %v39_v14  ;;  %778 = vmatpush3.msra.mxu0 %v59_v27  ;;  %v99_v14 = vld [vmem:[#allocation2 + $0x220] sm:$0xff] }
  0x27   :  { %750 = vmatprep.subr.mxu1 %v978_v0  ;;  %779 = vmatprep.subr.mxu0 %v978_v0 }
  0x28   :  { %751 = vmatpush3.msra.mxu1 %v38_v15  ;;  %780 = vmatpush3.msra.mxu0 %v58_v28  ;;  %v98_v15 = vld [vmem:[#allocation2 + $0x218] sm:$0xff] }
  0x29   :  { %752 = vmatprep.subr.mxu1 %v978_v0  ;;  %781 = vmatprep.subr.mxu0 %v978_v0 }
  0x2a   :  { %753 = vmatpush3.msra.mxu1 %v37_v16  ;;  %782 = vmatpush3.msra.mxu0 %v57_v29  ;;  %v97_v16 = vld [vmem:[#allocation2 + $0x210] sm:$0xff] }
  0x2b   :  { %754 = vmatprep.subr.mxu1 %v978_v0  ;;  %783 = vmatprep.subr.mxu0 %v978_v0  ;;  %v89_v29 = vld [vmem:[#allocation2 + $0x1d0] sm:$0xff] }
  0x2c   :  { %755 = vmatpush3.msra.mxu1 %v36_v17  ;;  %784 = vmatpush3.msra.mxu0 %v56_v30  ;;  %v96_v17 = vld [vmem:[#allocation2 + $0x208] sm:$0xff] }
  0x2d   :  { %756 = vmatprep.subr.mxu1 %v978_v0  ;;  %785 = vmatprep.subr.mxu0 %v978_v0  ;;  %v88_v30 = vld [vmem:[#allocation2 + $0x1c8] sm:$0xff] }
  0x2e   :  { %757 = vmatpush3.msra.mxu1 %v35_v18  ;;  %786 = vmatpush3.msra.mxu0 %v55_v31  ;;  %v95_v18 = vld [vmem:[#allocation2 + $0x200] sm:$0xff] }
  0x2f   :  { %758 = vmatprep.subr.mxu1 %v978_v0  ;;  %787 = vmatprep.subr.mxu0 %v978_v0  ;;  %v87_v31 = vld [vmem:[#allocation2 + $0x1c0] sm:$0xff] }
  0x30   :  { %759 = vmatpush3.msra.mxu1 %v34_v19  ;;  %788 = vmatpush3.msra.mxu0 %v54_v32  ;;  %v94_v19 = vld [vmem:[#allocation2 + $0x1f8] sm:$0xff] }
  0x31   :  { %798 = vmatprep.subr.mxu1 %v978_v0  ;;  %789 = vmatprep.subr.mxu0 %v978_v0  ;;  %v645_v32 = vld [vmem:[#allocation2 + $0x1b8] ss:$0 sm:$0xff] }
  0x32   :  { %790 = vmatpush3.msra.mxu0 %v53_v38 }
  0x33   :  { %791 = vmatprep.subr.mxu0 %v978_v0 }
  0x34   :  { %792 = vmatpush3.msra.mxu0 %v52_v39 }
  0x35   :  { %793 = vmatprep.subr.mxu0 %v978_v0 }
  0x36   :  { %794 = vmatpush3.msra.mxu0 %v51_v40 }
  0x37   :  { %803 = vmatprep.subr.mxu0 %v978_v0 }
  0xd5   :  { %v179_v34 = vpop.f32.mrf.mxu0 }
  0xd6   :  { %v180_v35 = vadd.f32 %v638_v33, %v179_v34 }
  0xd7   :  { %v727_v36 = vpop.f32.mrf.mxu0 }
  0xd8   :  { %v183_v37 = vmax.f32 %v180_v35, 0.0 }
  0xda   :  { %761 = vmatmul.mubr.f32.vlgmr.msra.gmra.mxu1 %v183_v37 }
  0xdb   :  { %800 = vmatprep.mubr.msk.f32.mxu1 %vm979_vm0, %v978_v0  ;;  %799 = vmatpush3.msk.msra.mxu1 %vm356_vm3, %v68_v52 }
  0xdc   :  { %838 = vmatprep.subr.mxu1 %v978_v0 }
 0x19a   :  { %v254_v42 = vpop.f32.mrf.mxu1 }
 0x19b   :  { %v255_v43 = vadd.f32 %v640_v41, %v254_v42 }
 0x19c   :  { %v762_v44 = vpop.f32.mrf.mxu1 }
 0x19d   :  { %v258_v45 = vmax.f32 %v255_v43, 0.0 }
 0x19f   :  { %796 = vmatmul.mubr.f32.vlgmr.msra.gmra.mxu0 %v258_v45 }
 0x1a0   :  { %835 = vmatprep.mubr.msk.f32.mxu0 %vm979_vm0, %v978_v0  ;;  %804 = vmatpush3.msra.mxu0 %v85_v53 }
 0x1a1   :  { %805 = vmatprep.subr.mxu0 %v978_v0 }
 0x1a2   :  { %806 = vmatpush3.msra.mxu0 %v84_v54 }
 0x1a3   :  { %807 = vmatprep.subr.mxu0 %v978_v0 }
 0x1a4   :  { %808 = vmatpush3.msra.mxu0 %v83_v55 }
 0x1a5   :  { %809 = vmatprep.subr.mxu0 %v978_v0 }
 0x1a6   :  { %810 = vmatpush3.msra.mxu0 %v82_v56 }
 0x1a7   :  { %811 = vmatprep.subr.mxu0 %v978_v0 }
 0x1a8   :  { %812 = vmatpush3.msra.mxu0 %v81_v57 }
 0x1a9   :  { %813 = vmatprep.subr.mxu0 %v978_v0 }
 0x1aa   :  { %814 = vmatpush3.msra.mxu0 %v80_v59 }
 0x1ab   :  { %815 = vmatprep.subr.mxu0 %v978_v0 }
 0x1ac   :  { %816 = vmatpush3.msra.mxu0 %v79_v60 }
 0x1ad   :  { %817 = vmatprep.subr.mxu0 %v978_v0 }
 0x1ae   :  { %818 = vmatpush3.msra.mxu0 %v78_v61 }
 0x1af   :  { %819 = vmatprep.subr.mxu0 %v978_v0 }
 0x1b0   :  { %820 = vmatpush3.msra.mxu0 %v77_v62 }
 0x1b1   :  { %821 = vmatprep.subr.mxu0 %v978_v0 }
 0x1b2   :  { %822 = vmatpush3.msra.mxu0 %v76_v63 }
 0x1b3   :  { %823 = vmatprep.subr.mxu0 %v978_v0 }
 0x1b4   :  { %824 = vmatpush3.msra.mxu0 %v75_v1 }
 0x1b5   :  { %825 = vmatprep.subr.mxu0 %v978_v0 }
 0x1b6   :  { %826 = vmatpush3.msra.mxu0 %v74_v2 }
 0x1b7   :  { %827 = vmatprep.subr.mxu0 %v978_v0 }
 0x1b8   :  { %828 = vmatpush3.msra.mxu0 %v73_v4 }
 0x1b9   :  { %829 = vmatprep.subr.mxu0 %v978_v0 }
 0x1ba   :  { %830 = vmatpush3.msra.mxu0 %v72_v9 }
 0x1bb   :  { %831 = vmatprep.subr.mxu0 %v978_v0 }
 0x1bc   :  { %832 = vmatpush3.msra.mxu0 %v71_v10 }
 0x1bd   :  { %833 = vmatprep.subr.mxu0 %v978_v0 }
 0x1be   :  { %834 = vmatpush3.msra.mxu0 %v70_v11 }
 0x25f   :  { %v329_v47 = vpop.f32.mrf.mxu0 }
 0x260   :  { %v330_v48 = vadd.f32 %v641_v46, %v329_v47 }
 0x261   :  { %v797_v49 = vpop.f32.mrf.mxu0 }
 0x262   :  { %v340_v50 = vmul.f32 0.5, %v330_v48  ;;  %334 = vst.msk [vmem:[#allocation6] sm:$0xff] %vm333_vm2, %v330_v48 }
 0x264   :  { %v341_v51 = vmul.f32 1.442695, %v340_v50 }
 0x266   :  { %883 = vpow2.f32 %v341_v51 }
 0x273   :  { %v884_v58 = vpop.eup %883 }
 0x274   :  { %344 = vrot.lane.b32.xlu0 %v884_v58, %s980_s0 }
 0x278   :  { %336 = vrot.lane.b32.xlu0 %v330_v48, %s980_s0 }
 0x2e6   :  { %v345_v5 = vpop.permute.xlu0 %344 }
 0x2e7   :  { %v347_v6 = vmul.f32 %v345_v5, %v1022_v3  ;;  %v102_v3 = vld [vmem:[#allocation2 + $0x238] sm:$0xff] }
 0x2e9   :  { %v348_v7 = vadd.f32 %v347_v6, %v330_v48 }
 0x2ea   :  { %v337_v8 = vpop.permute.xlu0 %336 }
 0x2eb   :  { %339 = vst.msk [vmem:[#allocation8] sm:$0xff] %vm333_vm2, %v337_v8  ;;  %801 = vmatmul.mubr.msk.f32.vlgmr.msra.gmra.mxu1 %vm333_vm2, %v348_v7 }
 0x2ec   :  { %870 = vmatprep.mubr.msk.f32.mxu1 %vm979_vm0, %v978_v0  ;;  %839 = vmatpush3.msra.mxu1 %v102_v3 }
 0x2ed   :  { %840 = vmatprep.subr.mxu1 %v978_v0 }
 0x2ee   :  { %841 = vmatpush3.msra.mxu1 %v101_v12 }
 0x2ef   :  { %842 = vmatprep.subr.mxu1 %v978_v0 }
 0x2f0   :  { %843 = vmatpush3.msra.mxu1 %v100_v13 }
 0x2f1   :  { %844 = vmatprep.subr.mxu1 %v978_v0 }
 0x2f2   :  { %845 = vmatpush3.msra.mxu1 %v99_v14 }
 0x2f3   :  { %846 = vmatprep.subr.mxu1 %v978_v0 }
 0x2f4   :  { %847 = vmatpush3.msra.mxu1 %v98_v15 }
 0x2f5   :  { %848 = vmatprep.subr.mxu1 %v978_v0 }
 0x2f6   :  { %849 = vmatpush3.msra.mxu1 %v97_v16 }
 0x2f7   :  { %850 = vmatprep.subr.mxu1 %v978_v0 }
 0x2f8   :  { %851 = vmatpush3.msra.mxu1 %v96_v17 }
 0x2f9   :  { %852 = vmatprep.subr.mxu1 %v978_v0 }
 0x2fa   :  { %853 = vmatpush3.msra.mxu1 %v95_v18 }
 0x2fb   :  { %854 = vmatprep.subr.mxu1 %v978_v0 }
 0x2fc   :  { %855 = vmatpush3.msra.mxu1 %v94_v19 }
 0x2fd   :  { %856 = vmatprep.subr.mxu1 %v978_v0 }
 0x2fe   :  { %857 = vmatpush3.msra.mxu1 %v93_v20 }
 0x2ff   :  { %858 = vmatprep.subr.mxu1 %v978_v0 }
 0x300   :  { %859 = vmatpush3.msra.mxu1 %v92_v21 }
 0x301   :  { %860 = vmatprep.subr.mxu1 %v978_v0 }
 0x302   :  { %861 = vmatpush3.msra.mxu1 %v91_v22 }
 0x303   :  { %862 = vmatprep.subr.mxu1 %v978_v0 }
 0x304   :  { %863 = vmatpush3.msra.mxu1 %v90_v23 }
 0x305   :  { %864 = vmatprep.subr.mxu1 %v978_v0 }
 0x306   :  { %865 = vmatpush3.msra.mxu1 %v89_v29 }
 0x307   :  { %866 = vmatprep.subr.mxu1 %v978_v0 }
 0x308   :  { %867 = vmatpush3.msra.mxu1 %v88_v30 }
 0x309   :  { %868 = vmatprep.subr.mxu1 %v978_v0 }
 0x30a   :  { %869 = vmatpush3.msra.mxu1 %v87_v31 }
 0x3ab   :  { %v426_v25 = vpop.f32.mrf.mxu1 }
 0x3ac   :  { %v427_v26 = vadd.f32 %v642_v24, %v426_v25 }
 0x3ad   :  { %v802_v27 = vpop.f32.mrf.mxu1 }
 0x3ae   :  { %v430_v28 = vmax.f32 %v427_v26, 0.0 }
 0x3b0   :  { %836 = vmatmul.mubr.f32.vlgmr.msra.gmra.mxu0 %v430_v28 }
 0x470   :  { %v501_v33 = vpop.f32.mrf.mxu0 }
 0x471   :  { %v502_v34 = vadd.f32 %v645_v32, %v501_v33 }
 0x472   :  { %v837_v35 = vpop.f32.mrf.mxu0 }
 0x473   :  { %v505_v36 = vmax.f32 %v502_v34, 0.0 }
 0x475   :  { %871 = vmatmul.mubr.f32.vlgmr.msra.gmra.mxu1 %v505_v36 }
 0x476   :  { %920 = shalt.err (!%p917_p9)
}
 0x477   :  { %615 = dma.vmem_to_hbm [thread:$0]  %s613_s24, 128, %s1114_s3, [#allocation7]  }
 0x478   :  { %s982_s28 = smov [#allocation8]  }
 0x479   :  { %s622_s29 = sshll.u32 %s982_s28, 4  ;;  %s623_s29 = int_to_ptr.vmem [resolvable:$true] %s622_s29 }
 0x47a   :  { %s929_s30 = scalar_lea.vmem %s623_s29, 128  ;;  %p934_p11 = scmp.lt.s32.totalorder %s623_s29, %s623_s29 }
 0x47b   :  { %p930_p10 = scmp.ne.s32.totalorder %s623_s29, %s929_s30  ;;  %p935_p12 = scmp.lt.s32.totalorder %s929_s30, %s929_s30 }
 0x47d   :  { %p936_p13 = por %p935_p12, %p934_p11 }
 0x47f   :  { %p937_p0 = pnand %p936_p13, %p930_p10 }
 0x481   :  { %940 = shalt.err (!%p937_p0)
}
 0x482   :  { %625 = dma.vmem_to_hbm [thread:$0]  %s623_s29, 128, %s1115_s4, [#allocation7]   ;;  %v646_v0 = vld [vmem:[#allocation2 + $0x240] ss:$0 sm:$0xff]  ;;  %v588_v41 = vlaneseq  ;;  %v104_v44 = vld [vmem:[#allocation2 + $0x248] sm:$0x1] }
 0x483   :  { %vm580_vm4 = vcmp.gt.f32.partialorder %v104_v44, 0.5  ;;  %v983_v47 = vmov 0   ;;  %s984_s3 = smov [#allocation5]   ;;  %vm594_vm6 = vcmask 56320  }
 0x484   :  { %v589_v45 = vshrl.u32 %v588_v41, 7  ;;  %v587_v48 = vsel %vm580_vm4, 1, %v983_v47  ;;  %s602_s7 = sshll.u32 %s984_s3, 4  ;;  %s603_s7 = int_to_ptr.vmem [resolvable:$true] %s602_s7 }
 0x485   :  { %s949_s4 = scalar_lea.vmem %s603_s7, 128  ;;  %p954_p2 = scmp.lt.s32.totalorder %s603_s7, %s603_s7 }
 0x486   :  { %v590_v46 = vsub.s32 0, %v589_v45  ;;  %p950_p1 = scmp.ne.s32.totalorder %s603_s7, %s949_s4  ;;  %p955_p3 = scmp.lt.s32.totalorder %s949_s4, %s949_s4 }
 0x488   :  { %v591_v49 = vrot.slane %v587_v48, %v590_v46  ;;  %p956_p4 = por %p955_p3, %p954_p2 }
 0x48a   :  { %vm592_vm5 = vcmp.eq.s32.totalorder %v591_v49, 1  ;;  %p957_p5 = pnand %p956_p4, %p950_p1 }
 0x535   :  { %v576_v37 = vpop.f32.mrf.mxu1 }
 0x536   :  { %v577_v38 = vadd.f32 %v646_v0, %v576_v37 }
 0x537   :  { %v872_v39 = vpop.f32.mrf.mxu1 }
 0x538   :  { %v647_v40 = vmul.f32 -1.442695, %v577_v38 }
 0x53a   :  { %885 = vpow2.f32 %v647_v40 }
 0x547   :  { %v886_v42 = vpop.eup %885 }
 0x548   :  { %v584_v43 = vadd.f32 1.0, %v886_v42 }
 0x54a   :  { %887 = vrcp.f32 %v584_v43 }
 0x557   :  { %v888_v50 = vpop.eup %887 }
 0x558   :  { %v593_v51 = vsel %vm592_vm5, %v888_v50, %v577_v38 }
 0x559   :  { %595 = vst.msk [vmem:[#allocation5] sm:$0xff] %vm594_vm6, %v593_v51 }
 0x55a   :  { %960 = shalt.err (!%p957_p5)
}
 0x55b   :  { %605 = dma.vmem_to_hbm [thread:$0]  %s603_s7, 128, %s1113_s2, [#allocation4]  }
 0x55c   :  { %971 = dma.done.wait [#allocation4], 128  }
 0x55d   :  { %972 = vsyncadd [#allocation4], 4294967168 }
 0x55e   :  { %973 = dma.done.wait [#allocation7], 256  }
 0x55f   :  { %974 = vsyncadd [#allocation7], 4294967040 }
 0x560   :  { %635 = vsyncpa [#allocation3], 1 }
 0x561   :  { %636 = vsyncpa [#allocation4], 1 }
 0x562   :  { %637 = vsyncpa [#allocation7], 1 }

</bundles_post_ra>
